<compile_context>
chip_gen: v7x
topology: tpu7x:2x2x1
jax: 0.10.0
libtpu: 0.0.40
codegen_flags: <defaults>
</compile_context>

<pallas_src>
import functools
import math

import jax
import jax.numpy as jnp
from jax.experimental import pallas as pl
from jax.experimental.pallas import tpu as pltpu

LANE = 128                     # last-dim padding granularity (lane width)
SUBLANE = 8                    # batch padding granularity (sublane width)
_SINGLE_CALL_MAX_ROWS = 64     # padded batches <= this use one un-gridded call


def _round_up(x, m):
    return ((x + m - 1) // m) * m


# ----------------------------- fused Pallas kernel --------------------------


def _fused_mlp_kernel(*refs, num_layers: int, act_fun: str, out_pads, matmul_dtype):
    """refs = (x_ref, w0_ref, ..., w_{L-1}_ref, bias_pack_ref, o_ref).

    Computes h = act(...act(x @ W0 + b0) @ W1 + b1 ...) @ W_{L-1} + b_{L-1}
    entirely in VMEM/vregs; only the final result hits o_ref.
    """
    x_ref = refs[0]
    w_refs = refs[1:1 + num_layers]
    b_ref = refs[1 + num_layers]          # (L, max_out_pad) packed biases, f32
    o_ref = refs[2 + num_layers]

    h = x_ref[...].astype(jnp.float32)
    for i in range(num_layers):
        w = w_refs[i][...]
        po = out_pads[i]
        b = b_ref[i:i + 1, :po]                              # (1, po) f32
        lhs = h if h.dtype == matmul_dtype else h.astype(matmul_dtype)
        rhs = w if w.dtype == matmul_dtype else w.astype(matmul_dtype)
        h = jnp.dot(lhs, rhs, preferred_element_type=jnp.float32) + b
        if i < num_layers - 1:                               # no activation on last
            if act_fun == "gelu":
                h = jax.nn.gelu(h, approximate=False)        # exact, like torch.nn.GELU
            else:                                            # default: ReLU
                h = jnp.maximum(h, 0.0)
    o_ref[...] = h.astype(o_ref.dtype)


# ----------------------------- one-time parameter packing -------------------


def prepare_dnn_params(params):
    """One-time packing (hoisted out of the per-call path):
       - first layer keeps its input rows UNPADDED (so x needs no feature pad),
       - every output width is zero-padded to a multiple of 128 (lane-dense),
       - all biases packed into one (L, max_out_pad) f32 array."""
    num_layers = len(params)
    out_pads = []
    w_padded = []
    for i, (w, b) in enumerate(params):
        d_in, d_out = w.shape
        pi = d_in if i == 0 else _round_up(d_in, LANE)
        po = _round_up(d_out, LANE)
        w_p = (jnp.zeros((pi, po), jnp.float32)
               .at[:d_in, :d_out].set(w.astype(jnp.float32)))
        w_padded.append(w_p)
        out_pads.append(po)

    max_po = max(out_pads)
    bias_pack = jnp.zeros((num_layers, max_po), jnp.float32)
    for i, (_, b) in enumerate(params):
        bias_pack = bias_pack.at[i, :b.shape[-1]].set(
            b.reshape(-1).astype(jnp.float32))

    return {
        "weights": w_padded,
        "bias_pack": bias_pack,
        "out_pads": tuple(out_pads),
        "dim_in": int(params[0][0].shape[0]),
        "dim_out": int(params[-1][0].shape[1]),
        "num_layers": num_layers,
    }


# ----------------------------- forward ---------------------------------------


def _pick_bm(b_pad, batch_block):
    """Largest batch tile (multiple of 8, <= batch_block) dividing b_pad,
    forced to give >= 2 grid steps (so v7x can use both TensorCores)."""
    t = b_pad // SUBLANE
    cap = min(max(1, t // 2), max(1, batch_block // SUBLANE))
    best = 1
    for d in range(1, cap + 1):
        if t % d == 0:
            best = d
    return best * SUBLANE


def dnn_forward(packed, x, *, act_fun="relu", matmul_dtype=jnp.float32,
                batch_block=512):
    """Equivalent of DNN.forward: the whole Linear/Act stack as ONE Pallas kernel."""
    num_layers = packed["num_layers"]
    weights = packed["weights"]
    bias_pack = packed["bias_pack"]
    out_pads = packed["out_pads"]
    d_in = packed["dim_in"]
    d_out = packed["dim_out"]
    dl_pad = out_pads[-1]

    batch, dim = x.shape
    assert dim == d_in, f"expected feature dim {d_in}, got {dim}"

    # Pad batch only to a sublane multiple (never up to a full batch tile).
    b_pad = _round_up(batch, SUBLANE)
    if b_pad != batch:
        x_p = jnp.zeros((b_pad, dim), x.dtype).at[:batch].set(x)
    else:
        x_p = x                                              # no copy at all

    kernel = functools.partial(
        _fused_mlp_kernel, num_layers=num_layers, act_fun=act_fun,
        out_pads=out_pads, matmul_dtype=matmul_dtype)

    # Advisory cost estimate for XLA's scheduler.
    itemsize = jnp.dtype(x.dtype).itemsize
    flops = 0
    bytes_accessed = x_p.size * itemsize + b_pad * dl_pad * itemsize
    hidden_elems = 0
    for i, w in enumerate(weights):
        flops += 2 * b_pad * w.shape[0] * w.shape[1]
        bytes_accessed += w.size * 4
        if i < num_layers - 1:
            hidden_elems += b_pad * w.shape[1]
    bytes_accessed += bias_pack.size * 4
    cost = pl.CostEstimate(
        flops=flops,
        transcendentals=hidden_elems if act_fun == "gelu" else 0,
        bytes_accessed=bytes_accessed)

    if b_pad <= _SINGLE_CALL_MAX_ROWS:
        # Single invocation, every array a full VMEM block (no grid bookkeeping).
        out_p = pl.pallas_call(
            kernel,
            out_shape=jax.ShapeDtypeStruct((b_pad, dl_pad), x.dtype),
            cost_estimate=cost,
        )(x_p, *weights, bias_pack)
    else:
        bm = _pick_bm(b_pad, batch_block)
        grid_len = b_pad // bm

        # x: last dim equals the full array dim (no 128 pad needed in HBM).
        in_specs = [pl.BlockSpec((bm, dim), lambda i: (i, 0))]
        # Weights + packed bias never change across grid steps -> single buffer.
        for w in weights:
            in_specs.append(pl.BlockSpec(w.shape, lambda i: (0, 0),
                                         pipeline_mode=pl.Buffered(1)))
        in_specs.append(pl.BlockSpec(bias_pack.shape, lambda i: (0, 0),
                                     pipeline_mode=pl.Buffered(1)))

        # Explicit VMEM budget (v7x: 64 MiB / TC, 32 MiB default scoped limit).
        max_w = max(out_pads)
        vmem_needed = (2 * bm * dim * itemsize            # x, double buffered
                       + 2 * bm * dl_pad * itemsize       # out, double buffered
                       + sum(w.size for w in weights) * 4  # Buffered(1) weights
                       + bias_pack.size * 4
                       + 4 * bm * max_w * 4)              # live activations
        vmem_limit = int(min(max(2 * vmem_needed, 32 << 20), 64 << 20))

        out_p = pl.pallas_call(
            kernel,
            out_shape=jax.ShapeDtypeStruct((b_pad, dl_pad), x.dtype),
            grid=(grid_len,),
            in_specs=in_specs,
            out_specs=pl.BlockSpec((bm, dl_pad), lambda i: (i, 0)),
            compiler_params=pltpu.CompilerParams(
                dimension_semantics=("parallel",),
                vmem_limit_bytes=vmem_limit),
            cost_estimate=cost,
        )(x_p, *weights, bias_pack)

    return out_p[:batch, :d_out]


# ----------------------------- parameter init --------------------------------


def init_dnn_params(key, dim, num_c, hidden_neurons):
    """Deterministic init matching torch.nn.Linear default U[-1/sqrt(fan_in), +]."""
    sizes = [dim] + list(hidden_neurons) + [num_c]
    params = []
    for i in range(len(sizes) - 1):
        fan_in, fan_out = sizes[i], sizes[i + 1]
        key, kw, kb = jax.random.split(key, 3)
        bound = 1.0 / math.sqrt(fan_in)
        w = jax.random.uniform(kw, (fan_in, fan_out), jnp.float32, -bound, bound)
        b = jax.random.uniform(kb, (fan_out,), jnp.float32, -bound, bound)
        params.append((w, b))
    return params


# --------------------------------- demo ---------------------------------------


if __name__ == "__main__":
    # DNN(dim=32, num_c=16, hiden_neurons=[64, 48], ActFun='Relu')
    # -> layers: 32->64 act, 64->48 act, 48->16 (no activation on last)
    dim, num_c = 32, 16
    hidden_neurons = [64, 48]

    key = jax.random.PRNGKey(0)
    key, kp = jax.random.split(key)
    params = init_dnn_params(kp, dim, num_c, hidden_neurons)

    # One-time packing / padding (hoisted out of the forward path).
    packed = prepare_dnn_params(params)

    def ref_forward(x, act="relu"):
        h = x
        for i, (w, b) in enumerate(params):
            h = h @ w + b
            if i < len(params) - 1:
                h = (jax.nn.gelu(h, approximate=False) if act == "gelu"
                     else jnp.maximum(h, 0.0))
        return h

    # 1) small batch -> single un-gridded call, f32 matmul, ReLU
    key, kx = jax.random.split(key)
    x_small = jax.random.normal(kx, (8, dim), jnp.float32)
    out_small = jax.block_until_ready(dnn_forward(packed, x_small, act_fun="relu"))
    assert out_small.shape == (8, num_c)
    assert jnp.allclose(out_small, ref_forward(x_small), atol=1e-5, rtol=1e-5)

    # 2) larger, non-tile-aligned batch -> gridded path (>=2 steps,
    #    Buffered(1) resident weights, parallel batch axis)
    key, kx2 = jax.random.split(key)
    x_big = jax.random.normal(kx2, (200, dim), jnp.float32)
    out_big = jax.block_until_ready(dnn_forward(packed, x_big, act_fun="relu"))
    assert out_big.shape == (200, num_c)
    assert jnp.allclose(out_big, ref_forward(x_big), atol=1e-4, rtol=1e-4)

    # 3) exact-GELU + bf16-on-MXU fast path (f32 accumulation; looser tolerance)
    out_gelu = jax.block_until_ready(
        dnn_forward(packed, x_small, act_fun="gelu", matmul_dtype=jnp.bfloat16))
    assert jnp.allclose(out_gelu, ref_forward(x_small, "gelu"),
                        atol=3e-2, rtol=3e-2)

    print("KERNEL_OK")
</pallas_src>

<mosaic_0001>
module attributes {stable_mosaic.version = 11 : i64} {
  func.func @_fused_mlp_kernel(%arg0: memref<8x32xf32, #tpu.memory_space<vmem>>, %arg1: memref<32x128xf32, #tpu.memory_space<vmem>>, %arg2: memref<128x128xf32, #tpu.memory_space<vmem>>, %arg3: memref<128x128xf32, #tpu.memory_space<vmem>>, %arg4: memref<3x128xf32, #tpu.memory_space<vmem>>, %arg5: memref<8x128xf32, #tpu.memory_space<vmem>>) attributes {dimension_semantics = [], scalar_prefetch = 0 : i64, scratch_operands = 0 : i64, tpu.core_type = #tpu.core_type<tc>} {
    %c0 = arith.constant 0 : index
    %c0_0 = arith.constant 0 : index
    %0 = vector.load %arg0[%c0, %c0_0] : memref<8x32xf32, #tpu.memory_space<vmem>>, vector<8x32xf32>
    %c0_1 = arith.constant 0 : index
    %c0_2 = arith.constant 0 : index
    %1 = vector.load %arg1[%c0_1, %c0_2] : memref<32x128xf32, #tpu.memory_space<vmem>>, vector<32x128xf32>
    %c0_3 = arith.constant 0 : index
    %c0_4 = arith.constant 0 : index
    %2 = vector.load %arg4[%c0_3, %c0_4] : memref<3x128xf32, #tpu.memory_space<vmem>>, vector<1x128xf32>
    %cst = arith.constant dense<0.000000e+00> : vector<8x128xf32>
    %3 = tpu.matmul %0, %1, %cst {dimension_numbers = #tpu.dot_dimension_numbers<[1], [0], [0], [1], [0, 0, 1, 1], [], []>} : vector<8x32xf32>, vector<32x128xf32>, vector<8x128xf32> -> vector<8x128xf32>
    %4 = vector.broadcast %2 : vector<1x128xf32> to vector<8x128xf32>
    %5 = arith.addf %3, %4 : vector<8x128xf32>
    %cst_5 = arith.constant 0.000000e+00 : f32
    %6 = vector.broadcast %cst_5 : f32 to vector<8x128xf32>
    %7 = arith.maximumf %5, %6 : vector<8x128xf32>
    %c0_6 = arith.constant 0 : index
    %c0_7 = arith.constant 0 : index
    %8 = vector.load %arg2[%c0_6, %c0_7] : memref<128x128xf32, #tpu.memory_space<vmem>>, vector<128x128xf32>
    %c1 = arith.constant 1 : index
    %c0_8 = arith.constant 0 : index
    %9 = vector.load %arg4[%c1, %c0_8] : memref<3x128xf32, #tpu.memory_space<vmem>>, vector<1x128xf32>
    %cst_9 = arith.constant dense<0.000000e+00> : vector<8x128xf32>
    %10 = tpu.matmul %7, %8, %cst_9 {dimension_numbers = #tpu.dot_dimension_numbers<[1], [0], [0], [1], [0, 0, 1, 1], [], []>} : vector<8x128xf32>, vector<128x128xf32>, vector<8x128xf32> -> vector<8x128xf32>
    %11 = vector.broadcast %9 : vector<1x128xf32> to vector<8x128xf32>
    %12 = arith.addf %10, %11 : vector<8x128xf32>
    %cst_10 = arith.constant 0.000000e+00 : f32
    %13 = vector.broadcast %cst_10 : f32 to vector<8x128xf32>
    %14 = arith.maximumf %12, %13 : vector<8x128xf32>
    %c0_11 = arith.constant 0 : index
    %c0_12 = arith.constant 0 : index
    %15 = vector.load %arg3[%c0_11, %c0_12] : memref<128x128xf32, #tpu.memory_space<vmem>>, vector<128x128xf32>
    %c2 = arith.constant 2 : index
    %c0_13 = arith.constant 0 : index
    %16 = vector.load %arg4[%c2, %c0_13] : memref<3x128xf32, #tpu.memory_space<vmem>>, vector<1x128xf32>
    %cst_14 = arith.constant dense<0.000000e+00> : vector<8x128xf32>
    %17 = tpu.matmul %14, %15, %cst_14 {dimension_numbers = #tpu.dot_dimension_numbers<[1], [0], [0], [1], [0, 0, 1, 1], [], []>} : vector<8x128xf32>, vector<128x128xf32>, vector<8x128xf32> -> vector<8x128xf32>
    %18 = vector.broadcast %16 : vector<1x128xf32> to vector<8x128xf32>
    %19 = arith.addf %17, %18 : vector<8x128xf32>
    %c0_15 = arith.constant 0 : index
    %c0_16 = arith.constant 0 : index
    %20 = vector.load %arg5[%c0_15, %c0_16] : memref<8x128xf32, #tpu.memory_space<vmem>>, vector<8x128xf32>
    tpu.vector_store %arg5[%c0_15, %c0_16], %19 {strides = array<i32>} : memref<8x128xf32, #tpu.memory_space<vmem>>, vector<8x128xf32>,
    return
  }
}

</mosaic_0001>

<bundles_post_ra>
// kernel: tpu_custom_call.1
= control target key start
LH: loop header
LB: loop body
LE: loop exit
PB: predicated region body
PF: predicated region fallthrough
CT: control target
= control target key end

     0   :  { %10 = vsyncpa [#allocation3], 0  ;;  %s805_s0 = inlined_call_operand.hbm [shape: f32[8,32], index: 0, kind: input, shape index: {}]   ;;  %s806_s1 = inlined_call_operand.hbm [shape: f32[32,128], index: 1, kind: input, shape index: {}]   ;;  %s807_s2 = inlined_call_operand.hbm [shape: f32[128,128], index: 2, kind: input, shape index: {}]   ;;  %s808_s3 = inlined_call_operand.hbm [shape: f32[128,128], index: 3, kind: input, shape index: {}]   ;;  %s809_s4 = inlined_call_operand.vmem [shape: f32[3,128], index: 4, kind: input, shape index: {}]   ;;  %s810_s5 = inlined_call_operand.hbm [shape: f32[8,128], index: 5, kind: output, shape index: {}]  }
   0x1   :  { %11 = vsyncpa [#allocation6], 0 }
   0x2   :  { %12 = vsyncpa [#allocation9], 0 }
   0x3   :  { %13 = vsyncpa [#allocation4], 0  ;;  %s666_s18 = smov [#allocation5]   ;;  %s548_s22 = scalar_lea.hbm %s806_s1, 512 }
   0x4   :  { %s29_s19 = sshll.u32 %s666_s18, 4  ;;  %p549_p0 = scmp.ne.s32.totalorder %s806_s1, %s548_s22  ;;  %s30_s19 = int_to_ptr.vmem [resolvable:$true] %s29_s19 }
   0x5   :  { %p552_p1 = scmp.lt.u32.totalorder %s548_s22, %s806_s1 }
   0x7   :  { %p554_p2 = pnand %p552_p1, %p549_p0 }
   0x9   :  { %557 = shalt.err (!%p554_p2)
}
   0xa   :  { %s558_s27 = scalar_lea.vmem %s30_s19, 512  ;;  %p563_p4 = scmp.lt.s32.totalorder %s30_s19, %s30_s19 }
   0xb   :  { %p559_p3 = scmp.ne.s32.totalorder %s30_s19, %s558_s27  ;;  %p564_p5 = scmp.lt.s32.totalorder %s558_s27, %s558_s27 }
   0xd   :  { %p565_p6 = por %p564_p5, %p563_p4 }
   0xf   :  { %p566_p7 = pnand %p565_p6, %p559_p3 }
  0x11   :  { %569 = shalt.err (!%p566_p7)
}
  0x12   :  { %s667_s28 = smov 128   ;;  %s668_s29 = smov 8  }
  0x13   :  { %35 = dma.hbm_to_vmem [thread:$0]  %s806_s1, 512, %s30_s19, [#allocation6], %s667_s28, %s667_s28, %s668_s29  }
  0x14   :  { %s669_s7 = smov [#allocation2]   ;;  %s670_s9 = smov [#allocation7]  }
  0x15   :  { %s20_s8 = sshll.u32 %s669_s7, 4  ;;  %s41_s10 = sshll.u32 %s670_s9, 4  ;;  %s21_s8 = int_to_ptr.vmem [resolvable:$true] %s20_s8  ;;  %s42_s10 = int_to_ptr.vmem [resolvable:$true] %s41_s10 }
  0x16   :  { %s570_s13 = scalar_lea.hbm %s805_s0, 128 }
  0x17   :  { %p571_p8 = scmp.ne.s32.totalorder %s805_s0, %s570_s13  ;;  %p574_p9 = scmp.lt.u32.totalorder %s570_s13, %s805_s0 }
  0x19   :  { %p576_p10 = pnand %p574_p9, %p571_p8 }
  0x1b   :  { %579 = shalt.err (!%p576_p10)
}
  0x1c   :  { %s580_s1 = scalar_lea.vmem %s21_s8, 128  ;;  %p585_p12 = scmp.lt.s32.totalorder %s21_s8, %s21_s8 }
  0x1d   :  { %p581_p11 = scmp.ne.s32.totalorder %s21_s8, %s580_s1  ;;  %p586_p13 = scmp.lt.s32.totalorder %s580_s1, %s580_s1 }
  0x1f   :  { %p587_p0 = por %p586_p13, %p585_p12 }
  0x21   :  { %p588_p1 = pnand %p587_p0, %p581_p11 }
  0x23   :  { %591 = shalt.err (!%p588_p1)
}
  0x24   :  { %23 = dma.hbm_to_vmem [thread:$0]  %s805_s0, 128, %s21_s8, [#allocation3]  }
  0x25   :  { %s592_s22 = scalar_lea.hbm %s807_s2, 2048 }
  0x26   :  { %p593_p2 = scmp.ne.s32.totalorder %s807_s2, %s592_s22  ;;  %p596_p3 = scmp.lt.u32.totalorder %s592_s22, %s807_s2 }
  0x28   :  { %p598_p4 = pnand %p596_p3, %p593_p2 }
  0x2a   :  { %601 = shalt.err (!%p598_p4)
}
  0x2b   :  { %s602_s27 = scalar_lea.vmem %s42_s10, 2048  ;;  %p607_p6 = scmp.lt.s32.totalorder %s42_s10, %s42_s10 }
  0x2c   :  { %p603_p5 = scmp.ne.s32.totalorder %s42_s10, %s602_s27  ;;  %p608_p7 = scmp.lt.s32.totalorder %s602_s27, %s602_s27 }
  0x2e   :  { %p609_p8 = por %p608_p7, %p607_p6 }
  0x30   :  { %p610_p9 = pnand %p609_p8, %p603_p5 }
  0x32   :  { %613 = shalt.err (!%p610_p9)
}
  0x33   :  { %47 = dma.hbm_to_vmem [thread:$0]  %s807_s2, 2048, %s42_s10, [#allocation6], %s667_s28, %s667_s28, %s668_s29  }
  0x34   :  { %s671_s6 = smov [#allocation8]   ;;  %s614_s11 = scalar_lea.hbm %s808_s3, 2048 }
  0x35   :  { %s53_s7 = sshll.u32 %s671_s6, 4  ;;  %p615_p10 = scmp.ne.s32.totalorder %s808_s3, %s614_s11  ;;  %s54_s7 = int_to_ptr.vmem [resolvable:$true] %s53_s7 }
  0x36   :  { %p618_p11 = scmp.lt.u32.totalorder %s614_s11, %s808_s3 }
  0x38   :  { %p620_p12 = pnand %p618_p11, %p615_p10 }
  0x3a   :  { %623 = shalt.err (!%p620_p12)
}
  0x3b   :  { %s624_s16 = scalar_lea.vmem %s54_s7, 2048  ;;  %p629_p0 = scmp.lt.s32.totalorder %s54_s7, %s54_s7 }
  0x3c   :  { %p625_p13 = scmp.ne.s32.totalorder %s54_s7, %s624_s16  ;;  %p630_p1 = scmp.lt.s32.totalorder %s624_s16, %s624_s16 }
  0x3e   :  { %p631_p2 = por %p630_p1, %p629_p0 }
  0x40   :  { %p632_p3 = pnand %p631_p2, %p625_p13 }
  0x42   :  { %635 = shalt.err (!%p632_p3)
}
  0x43   :  { %59 = dma.hbm_to_vmem [thread:$0]  %s808_s3, 2048, %s54_s7, [#allocation9], %s667_s28, %s667_s28, %s668_s29  }
  0x44   :  { %658 = dma.done.wait [#allocation3], 128  }
  0x45   :  { %659 = vsyncadd [#allocation3], 4294967168 }
  0x46   :  { %660 = dma.done.wait [#allocation6], 2560  }
  0x47   :  { %661 = vsyncadd [#allocation6], 4294964736 }
  0x48   :  { %662 = dma.done.wait [#allocation9], 2048  }
  0x49   :  { %663 = vsyncadd [#allocation9], 4294965248  ;;  %v672_v0 = vmov 0.0|0.0   ;;  %vm673_vm0 = vmmov 0   ;;  %v674_v1 = vmov 0.0   ;;  %v75_v2 = vld [vmem:[#allocation5] sm:$0xff] }
  0x4a   :  { %484 = vmatprep.subr.bf16.mxu0 %v672_v0  ;;  %411 = vmatprep.mubr.msk.f32.mxu0 %vm673_vm0, %v674_v1  ;;  %v76_v3 = vld [vmem:[#allocation5 + $0x8] sm:$0xff]  ;;  %v77_v4 = vld [vmem:[#allocation5 + $0x10] sm:$0xff]  ;;  %v78_v6 = vld [vmem:[#allocation5 + $0x18] sm:$0xff]  ;;  %vm84_vm1 = vcmask 261120   ;;  %s675_s19 = smov [#allocation10]  }
  0x4b   :  { %490 = vmatprep.subr.bf16.mxu1 %v672_v0  ;;  %446 = vmatprep.mubr.msk.f32.mxu1 %vm673_vm0, %v674_v1  ;;  %v485_v5 = vpack.c.bf16 %v76_v3, %v75_v2  ;;  %v159_v7 = vld [vmem:[#allocation7] sm:$0xff]  ;;  %v160_v8 = vld [vmem:[#allocation7 + $0x8] sm:$0xff]  ;;  %v161_v9 = vld [vmem:[#allocation7 + $0x10] sm:$0xff]  ;;  %v488_v11 = vpack.c.bf16 %v78_v6, %v77_v4  ;;  %s349_s20 = sshll.u32 %s675_s19, 4  ;;  %s350_s20 = int_to_ptr.vmem [resolvable:$true] %s349_s20 }
  0x4c   :  { %v162_v10 = vld [vmem:[#allocation7 + $0x18] sm:$0xff]  ;;  %v491_v12 = vpack.c.bf16 %v160_v8, %v159_v7  ;;  %v163_v14 = vld [vmem:[#allocation7 + $0x20] sm:$0xff]  ;;  %v164_v15 = vld [vmem:[#allocation7 + $0x28] sm:$0xff]  ;;  %s636_s21 = scalar_lea.vmem %s350_s20, 128  ;;  %p641_p5 = scmp.lt.s32.totalorder %s350_s20, %s350_s20 }
  0x4d   :  { %486 = vmatpush3.bf16.msra.mxu0 %v485_v5  ;;  %v494_v13 = vpack.c.bf16 %v162_v10, %v161_v9  ;;  %v74_v16 = vld [vmem:[#allocation2] sm:$0xff]  ;;  %v497_v17 = vpack.c.bf16 %v164_v15, %v163_v14  ;;  %v165_v18 = vld [vmem:[#allocation7 + $0x30] sm:$0xff]  ;;  %v167_v21 = vld [vmem:[#allocation7 + $0x40] sm:$0xff]  ;;  %p637_p4 = scmp.ne.s32.totalorder %s350_s20, %s636_s21  ;;  %p642_p6 = scmp.lt.s32.totalorder %s636_s21, %s636_s21 }
  0x4e   :  { %487 = vmatprep.subr.bf16.mxu0 %v672_v0  ;;  %492 = vmatpush3.bf16.msra.mxu1 %v491_v12  ;;  %v166_v19 = vld [vmem:[#allocation7 + $0x38] sm:$0xff]  ;;  %v168_v22 = vld [vmem:[#allocation7 + $0x48] sm:$0xff]  ;;  %v169_v24 = vld [vmem:[#allocation7 + $0x50] sm:$0xff] }
  0x4f   :  { %493 = vmatprep.subr.bf16.mxu1 %v672_v0  ;;  %v500_v20 = vpack.c.bf16 %v166_v19, %v165_v18  ;;  %v503_v23 = vpack.c.bf16 %v168_v22, %v167_v21  ;;  %v170_v25 = vld [vmem:[#allocation7 + $0x58] sm:$0xff]  ;;  %v171_v27 = vld [vmem:[#allocation7 + $0x60] sm:$0xff]  ;;  %v172_v28 = vld [vmem:[#allocation7 + $0x68] sm:$0xff]  ;;  %p643_p7 = por %p642_p6, %p641_p5 }
  0x50   :  { %v506_v26 = vpack.c.bf16 %v170_v25, %v169_v24  ;;  %v509_v29 = vpack.c.bf16 %v172_v28, %v171_v27  ;;  %v173_v30 = vld [vmem:[#allocation7 + $0x70] sm:$0xff]  ;;  %v174_v31 = vld [vmem:[#allocation7 + $0x78] sm:$0xff]  ;;  %v251_v33 = vld [vmem:[#allocation8] sm:$0xff] }
  0x51   :  { %489 = vmatpush3.bf16.msra.mxu0 %v488_v11  ;;  %v512_v32 = vpack.c.bf16 %v174_v31, %v173_v30  ;;  %v252_v34 = vld [vmem:[#allocation8 + $0x8] sm:$0xff]  ;;  %v253_v35 = vld [vmem:[#allocation8 + $0x10] sm:$0xff]  ;;  %v254_v37 = vld [vmem:[#allocation8 + $0x18] sm:$0xff]  ;;  %p644_p8 = pnand %p643_p7, %p637_p4 }
  0x52   :  { %514 = vmatprep.subr.bf16.mxu0 %v672_v0  ;;  %495 = vmatpush3.bf16.msra.mxu1 %v494_v13  ;;  %v515_v36 = vpack.c.bf16 %v252_v34, %v251_v33  ;;  %v518_v38 = vpack.c.bf16 %v254_v37, %v253_v35  ;;  %v255_v39 = vld [vmem:[#allocation8 + $0x20] sm:$0xff]  ;;  %v256_v40 = vld [vmem:[#allocation8 + $0x28] sm:$0xff]  ;;  %v257_v42 = vld [vmem:[#allocation8 + $0x30] sm:$0xff] }
  0x53   :  { %496 = vmatprep.subr.bf16.mxu1 %v672_v0  ;;  %v521_v41 = vpack.c.bf16 %v256_v40, %v255_v39  ;;  %v258_v43 = vld [vmem:[#allocation8 + $0x38] sm:$0xff]  ;;  %v259_v45 = vld [vmem:[#allocation8 + $0x40] sm:$0xff]  ;;  %v260_v46 = vld [vmem:[#allocation8 + $0x48] sm:$0xff] }
  0x54   :  { %412 = vmatmul.mubr.msk.f32.vlgmr.msra.gmra.mrb[0].mxu0 %vm84_vm1, %v74_v16  ;;  %v524_v44 = vpack.c.bf16 %v258_v43, %v257_v42  ;;  %v527_v47 = vpack.c.bf16 %v260_v46, %v259_v45  ;;  %v261_v48 = vld [vmem:[#allocation8 + $0x50] sm:$0xff]  ;;  %v262_v49 = vld [vmem:[#allocation8 + $0x58] sm:$0xff]  ;;  %v263_v51 = vld [vmem:[#allocation8 + $0x60] sm:$0xff] }
  0x55   :  { %481 = vmatprep.mubr.msk.f32.mxu0 %vm673_vm0, %v674_v1  ;;  %516 = vmatpush3.bf16.msra.mxu0 %v515_v36  ;;  %v530_v50 = vpack.c.bf16 %v262_v49, %v261_v48  ;;  %v264_v52 = vld [vmem:[#allocation8 + $0x68] sm:$0xff]  ;;  %v360_v54 = vld [vmem:[%s809_s4] ss:$0 sm:$0xff]  ;;  %v265_v59 = vld [vmem:[#allocation8 + $0x70] sm:$0xff] }
  0x56   :  { %498 = vmatpush3.bf16.msra.mxu1 %v497_v17  ;;  %517 = vmatprep.subr.bf16.mxu0 %v672_v0  ;;  %v533_v53 = vpack.c.bf16 %v264_v52, %v263_v51  ;;  %v266_v60 = vld [vmem:[#allocation8 + $0x78] sm:$0xff] }
  0x57   :  { %499 = vmatprep.subr.bf16.mxu1 %v672_v0  ;;  %v536_v61 = vpack.c.bf16 %v266_v60, %v265_v59  ;;  %v362_v62 = vld [vmem:[%s809_s4 + $0x1] ss:$0 sm:$0xff]  ;;  %v363_v3 = vld [vmem:[%s809_s4 + $0x2] ss:$0 sm:$0xff] }
  0x59   :  { %519 = vmatpush3.bf16.msra.mxu0 %v518_v38 }
  0x5a   :  { %501 = vmatpush3.bf16.msra.mxu1 %v500_v20  ;;  %520 = vmatprep.subr.bf16.mxu0 %v672_v0 }
  0x5b   :  { %502 = vmatprep.subr.bf16.mxu1 %v672_v0 }
  0x5d   :  { %522 = vmatpush3.bf16.msra.mxu0 %v521_v41 }
  0x5e   :  { %504 = vmatpush3.bf16.msra.mxu1 %v503_v23  ;;  %523 = vmatprep.subr.bf16.mxu0 %v672_v0 }
  0x5f   :  { %505 = vmatprep.subr.bf16.mxu1 %v672_v0 }
  0x61   :  { %525 = vmatpush3.bf16.msra.mxu0 %v524_v44 }
  0x62   :  { %507 = vmatpush3.bf16.msra.mxu1 %v506_v26  ;;  %526 = vmatprep.subr.bf16.mxu0 %v672_v0 }
  0x63   :  { %508 = vmatprep.subr.bf16.mxu1 %v672_v0 }
  0x65   :  { %528 = vmatpush3.bf16.msra.mxu0 %v527_v47 }
  0x66   :  { %510 = vmatpush3.bf16.msra.mxu1 %v509_v29  ;;  %529 = vmatprep.subr.bf16.mxu0 %v672_v0 }
  0x67   :  { %511 = vmatprep.subr.bf16.mxu1 %v672_v0 }
  0x69   :  { %531 = vmatpush3.bf16.msra.mxu0 %v530_v50 }
  0x6a   :  { %513 = vmatpush3.bf16.msra.mxu1 %v512_v32  ;;  %532 = vmatprep.subr.bf16.mxu0 %v672_v0 }
  0x6d   :  { %534 = vmatpush3.bf16.msra.mxu0 %v533_v53 }
  0x6e   :  { %535 = vmatprep.subr.bf16.mxu0 %v672_v0 }
  0x71   :  { %537 = vmatpush3.bf16.msra.mxu0 %v536_v61 }
 0x127   :  { %v154_v55 = vpop.f32.mrb[0].mxu0 }
 0x128   :  { %v155_v56 = vadd.f32 %v360_v54, %v154_v55  ;;  %v413_v57 = vpop.f32.mrb[1].mxu0 }
 0x12a   :  { %v158_v58 = vmax.f32 %v155_v56, 0.0 }
 0x12c   :  { %447 = vmatmul.mubr.f32.vlgmr.msra.gmra.mrb[0].mxu1 %v158_v58 }
 0x1ff   :  { %v246_v63 = vpop.f32.mrb[0].mxu1 }
 0x200   :  { %v247_v1 = vadd.f32 %v362_v62, %v246_v63  ;;  %v448_v0 = vpop.f32.mrb[1].mxu1 }
 0x202   :  { %v250_v2 = vmax.f32 %v247_v1, 0.0 }
 0x204   :  { %482 = vmatmul.mubr.f32.vlgmr.msra.gmra.mrb[2].mxu0 %v250_v2 }
 0x2d7   :  { %v338_v4 = vpop.f32.mrb[2].mxu0 }
 0x2d8   :  { %v339_v5 = vadd.f32 %v363_v3, %v338_v4  ;;  %v483_v6 = vpop.f32.mrb[3].mxu0 }
 0x2da   :  { %342 = vst [vmem:[#allocation10] sm:$0xff] %v339_v5 }
 0x2db   :  { %647 = shalt.err (!%p644_p8)
}
 0x2dc   :  { %s648_s24 = scalar_lea.hbm %s810_s5, 128 }
 0x2dd   :  { %p649_p9 = scmp.ne.s32.totalorder %s810_s5, %s648_s24  ;;  %p652_p10 = scmp.lt.u32.totalorder %s648_s24, %s810_s5 }
 0x2df   :  { %p654_p11 = pnand %p652_p10, %p649_p9 }
 0x2e1   :  { %657 = shalt.err (!%p654_p11)
}
 0x2e2   :  { %352 = dma.vmem_to_hbm [thread:$0]  %s350_s20, 128, %s810_s5, [#allocation4]  }
 0x2e3   :  { %664 = dma.done.wait [#allocation4], 128  }
 0x2e4   :  { %665 = vsyncadd [#allocation4], 4294967168 }
 0x2e5   :  { %356 = vsyncpa [#allocation3], 1 }
 0x2e6   :  { %357 = vsyncpa [#allocation6], 1 }
 0x2e7   :  { %358 = vsyncpa [#allocation9], 1 }
 0x2e8   :  { %359 = vsyncpa [#allocation4], 1 }

</bundles_post_ra>
